<compile_context>
chip_gen: v7x
topology: tpu7x:2x2x1
jax: 0.10.0
libtpu: 0.0.40
codegen_flags: <defaults>
</compile_context>

<pallas_src>
import jax
import jax.numpy as jnp
from jax import lax
from jax.experimental import pallas as pl
from jax.experimental.pallas import tpu as pltpu


def nw_attention_kernel(w_ref, q_ref, k_ref, v_ref, o_ref):
    # w_ref: SMEM (1,) f32 — bandwidth parameter
    # q_ref: VMEM (1, TILE_N)            queries, lane-dense
    # k_ref: VMEM (K, 1) or (K, TILE_N)  keys   (deduplicated or full layout)
    # v_ref: VMEM (K, 1) or (K, TILE_N)  values
    # o_ref: VMEM (1, TILE_N) f32        output, lane-dense (unmasked vst)
    w = w_ref[0]
    c = -0.5 * w * w                          # folded once on the scalar ALU

    q = q_ref[...].astype(jnp.float32)        # (1, TILE_N)
    k = k_ref[...].astype(jnp.float32)        # (K, 1) or (K, TILE_N)
    v = v_ref[...].astype(jnp.float32)

    # -((q-k)*w)^2/2 == c*k^2 - 2c*k*q + c*q^2; c*q^2 is constant along the
    # softmax (K) axis, so drop it. 1 mul + 1 fma per element on the VPU.
    a = c * (k * k)
    b = (-2.0 * c) * k
    scores = a + b * q                        # (K, TILE_N)

    # numerically-stable softmax over K (axis 0), normalization fused into out
    m = jnp.max(scores, axis=0, keepdims=True)      # (1, TILE_N)   XLU
    e = jnp.exp(scores - m)                         # (K, TILE_N)   EUP
    den = jnp.sum(e, axis=0, keepdims=True)         # (1, TILE_N)   XLU

    kdim, kv_cols = v.shape
    if kv_cols == 1 and kdim >= 128:
        # deduplicated values shared by every query column: push the weighted
        # sum onto the otherwise-idle MXU ((1,K) @ (K,TILE_N), lhs pre-"T"d
        # via contracting dims — no in-kernel transpose).
        num = lax.dot_general(v, e, (((0,), (0,)), ((), ())),
                              preferred_element_type=jnp.float32)
    else:
        num = jnp.sum(e * v, axis=0, keepdims=True)  # (1, TILE_N)

    o_ref[...] = num * pl.reciprocal(den, approx=False)   # exact reciprocal


def nw_kernel_regression(queries, keys, values, w, *, tile_n=None):
    """queries: (N,); keys/values: (N, K) (PyTorch layout) or deduplicated (1, K);
    w: (1,). Returns (N,) f32."""
    n = queries.shape[0]
    nk, kdim = keys.shape
    assert values.shape == keys.shape and nk in (1, n)
    dedup = (nk == 1)

    # --- tiling: queries / output on the lane axis (lane-dense stores) ---
    n128 = ((n + 127) // 128) * 128
    itemsize = jnp.dtype(keys.dtype).itemsize
    if tile_n is None:
        # ~40 MiB per-step budget: safe under v7x's 64 MiB physical VMEM and
        # grantable via vmem_limit_bytes on v5e/v6e; still big enough to
        # amortize the ~0.35us per-grid-step overhead.
        bytes_per_col = kdim * (6 * 4 + (0 if dedup else 4 * itemsize)) + 64
        tile_n = (40 * 2**20) // bytes_per_col
        tile_n = int(min(tile_n, 2048, n128))
    tile_n = max(128, (int(tile_n) // 128) * 128)
    tile_n = min(tile_n, n128)
    grid_n = pl.cdiv(n128, tile_n)
    n_pad = grid_n * tile_n

    # Only the tiny (1, N) query row is padded on the host. keys/values are
    # NOT padded or re-tiled in HBM: a ragged last block (if any) is handled by
    # Pallas block masking (garbage columns are discarded by the output slice).
    q2d = queries.reshape(1, n)
    if n_pad != n:
        q2d = jnp.pad(q2d, ((0, 0), (0, n_pad - n)))

    # Transpose keys/values once on the host so K sits on sublanes, N on lanes.
    # For the deduplicated (1, K) layout this is a trivial (K, 1) column.
    k_t = keys.T
    v_t = values.T

    if dedup:
        kv_spec = pl.BlockSpec((kdim, 1), lambda i: (0, 0))
    else:
        kv_spec = pl.BlockSpec((kdim, tile_n), lambda i: (0, i))
        # TODO(synk): on v6e consider pipeline_mode=pl.Buffered(3) here if a
        # profile shows exposed DMA (skip on v7x: only 64 MiB VMEM).

    # explicit scoped-VMEM budget from the real per-step footprint
    kv_cols = 1 if dedup else tile_n
    per_step = 2 * (tile_n * jnp.dtype(queries.dtype).itemsize   # q, 2 buffers
                    + 2 * kdim * kv_cols * itemsize              # k+v, 2 buffers
                    + tile_n * 4)                                # out, 2 buffers
    per_step += 8 * kdim * tile_n * 4                            # f32 intermediates
    vmem_limit = int(min(max(2 * per_step, 32 * 2**20), 64 * 2**20))

    out = pl.pallas_call(
        nw_attention_kernel,
        out_shape=jax.ShapeDtypeStruct((1, n_pad), jnp.float32),
        grid=(grid_n,),
        in_specs=[
            pl.BlockSpec(memory_space=pltpu.MemorySpace.SMEM),   # w (1,) scalar
            pl.BlockSpec((1, tile_n), lambda i: (0, i)),         # queries
            kv_spec,                                             # keys
            kv_spec,                                             # values
        ],
        out_specs=pl.BlockSpec((1, tile_n), lambda i: (0, i)),
        compiler_params=pltpu.CompilerParams(
            # TODO(synk): switch to pltpu.CORE_PARALLEL if a v7x profile shows
            # one TensorCore idle; "parallel" is correct everywhere.
            dimension_semantics=("parallel",),
            vmem_limit_bytes=vmem_limit),
    )(w.astype(jnp.float32), q2d, k_t, v_t)
    return out[0, :n]


def f(x):
    return 2.0 * jnp.sin(x) + x ** 0.8


def nw_reference(queries, keys, values, w):
    """Plain-JAX f32 reference with the original (un-rewritten) formula."""
    q = queries.astype(jnp.float32)[:, None]          # (N, 1)
    k = keys.astype(jnp.float32)                      # (1 or N, K)
    v = values.astype(jnp.float32)
    attn = jax.nn.softmax(-((q - k) * w[0]) ** 2 / 2.0, axis=1)
    return jnp.sum(attn * v, axis=1)


if __name__ == "__main__":
    key = jax.random.PRNGKey(0)
    k_w, k_xtrain, k_noise, k_bk, k_bv, k_bq = jax.random.split(key, 6)

    n_train = 50     # K: number of key/value pairs (matches the spec)
    n_test = 256     # number of queries (rows on the lane axis)

    x_train = jnp.sort(jax.random.uniform(k_xtrain, (n_train,)) * 5.0)
    y_train = f(x_train) + 0.5 * jax.random.normal(k_noise, (n_train,))
    x_test = jnp.arange(n_test, dtype=jnp.float32) * (5.0 / n_test)

    # module parameter: self.w = nn.Parameter(torch.rand((1,)))
    w = jax.random.uniform(k_w, (1,), dtype=jnp.float32)

    # bf16 inputs for the HBM->VMEM DMA; all softmax math stays f32 in-kernel.
    q_bf = x_test.astype(jnp.bfloat16)                 # (N,)
    k_bf = x_train.astype(jnp.bfloat16)[None, :]       # (1, K) deduplicated
    v_bf = y_train.astype(jnp.bfloat16)[None, :]       # (1, K)

    # 1) deduplicated keys/values (what the reference script's repeated rows mean)
    out_dedup = nw_kernel_regression(q_bf, k_bf, v_bf, w)
    jax.block_until_ready(out_dedup)
    ref = nw_reference(q_bf, k_bf, v_bf, w)
    assert out_dedup.shape == (n_test,)
    assert jnp.allclose(out_dedup, ref, rtol=1e-3, atol=1e-4)

    # 2) literal PyTorch layout: keys/values repeated per query row
    keys_full = jnp.tile(k_bf, (n_test, 1))
    values_full = jnp.tile(v_bf, (n_test, 1))
    out_full = nw_kernel_regression(q_bf, keys_full, values_full, w)
    jax.block_until_ready(out_full)
    assert jnp.allclose(out_full, ref, rtol=1e-3, atol=1e-4)

    # 3) larger-K deduplicated case exercising the MXU reduction path (K >= 128)
    k_big = (jax.random.uniform(k_bk, (1, 256)) * 5.0).astype(jnp.bfloat16)
    v_big = jax.random.normal(k_bv, (1, 256)).astype(jnp.bfloat16)
    q_big = (jax.random.uniform(k_bq, (384,)) * 5.0).astype(jnp.bfloat16)
    out_big = nw_kernel_regression(q_big, k_big, v_big, w)
    jax.block_until_ready(out_big)
    ref_big = nw_reference(q_big, k_big, v_big, w)
    assert jnp.allclose(out_big, ref_big, rtol=1e-3, atol=1e-4)

    print("KERNEL_OK")
</pallas_src>

<mosaic_0001>
module attributes {stable_mosaic.version = 11 : i64} {
  func.func @nw_attention_kernel(%arg0: i32, %arg1: memref<1xf32, #tpu.memory_space<smem>>, %arg2: memref<1x256xbf16, #tpu.memory_space<vmem>>, %arg3: memref<50x1xbf16, #tpu.memory_space<vmem>>, %arg4: memref<50x1xbf16, #tpu.memory_space<vmem>>, %arg5: memref<1x256xf32, #tpu.memory_space<vmem>>) attributes {dimension_semantics = [#tpu.dimension_semantics<parallel>], iteration_bounds = array<i64: 1>, scalar_prefetch = 0 : i64, scratch_operands = 0 : i64, tpu.core_type = #tpu.core_type<tc>, window_params = [{transform_indices = @transform_0, window_bounds = array<i64: 1>}, {transform_indices = @transform_1, window_bounds = array<i64: 1, 256>}, {pipeline_mode = #tpu.pipeline_mode<synchronous>, transform_indices = @transform_2, window_bounds = array<i64: 50, 1>}, {pipeline_mode = #tpu.pipeline_mode<synchronous>, transform_indices = @transform_3, window_bounds = array<i64: 50, 1>}, {transform_indices = @transform_4, window_bounds = array<i64: 1, 256>}]} {
    %c0 = arith.constant 0 : index
    %0 = memref.load %arg1[%c0] : memref<1xf32, #tpu.memory_space<smem>>
    %cst = arith.constant -5.000000e-01 : f32
    %1 = arith.mulf %cst, %0 : f32
    %2 = arith.mulf %1, %0 : f32
    %c0_0 = arith.constant 0 : index
    %c0_1 = arith.constant 0 : index
    %3 = vector.load %arg2[%c0_0, %c0_1] : memref<1x256xbf16, #tpu.memory_space<vmem>>, vector<1x256xbf16>
    %4 = arith.extf %3 : vector<1x256xbf16> to vector<1x256xf32>
    %c0_2 = arith.constant 0 : index
    %c0_3 = arith.constant 0 : index
    %5 = vector.load %arg3[%c0_2, %c0_3] : memref<50x1xbf16, #tpu.memory_space<vmem>>, vector<50x1xbf16>
    %6 = arith.extf %5 : vector<50x1xbf16> to vector<50x1xf32>
    %c0_4 = arith.constant 0 : index
    %c0_5 = arith.constant 0 : index
    %7 = vector.load %arg4[%c0_4, %c0_5] : memref<50x1xbf16, #tpu.memory_space<vmem>>, vector<50x1xbf16>
    %8 = arith.extf %7 : vector<50x1xbf16> to vector<50x1xf32>
    %9 = arith.mulf %6, %6 : vector<50x1xf32>
    %10 = vector.broadcast %2 : f32 to vector<50x1xf32>
    %11 = arith.mulf %10, %9 : vector<50x1xf32>
    %cst_6 = arith.constant -2.000000e+00 : f32
    %12 = arith.mulf %cst_6, %2 : f32
    %13 = vector.broadcast %12 : f32 to vector<50x1xf32>
    %14 = arith.mulf %13, %6 : vector<50x1xf32>
    %15 = vector.broadcast %14 : vector<50x1xf32> to vector<50x256xf32>
    %16 = vector.broadcast %4 : vector<1x256xf32> to vector<50x256xf32>
    %17 = arith.mulf %15, %16 : vector<50x256xf32>
    %18 = vector.broadcast %11 : vector<50x1xf32> to vector<50x256xf32>
    %19 = arith.addf %18, %17 : vector<50x256xf32>
    %cst_7 = arith.constant dense<0xFF800000> : vector<256xf32>
    %20 = vector.multi_reduction <maximumf>, %19, %cst_7 [0] : vector<50x256xf32> to vector<256xf32>
    %21 = vector.shape_cast %20 : vector<256xf32> to vector<1x256xf32>
    %22 = vector.broadcast %21 : vector<1x256xf32> to vector<50x256xf32>
    %23 = arith.subf %19, %22 : vector<50x256xf32>
    %24 = math.exp %23 : vector<50x256xf32>
    %cst_8 = arith.constant dense<0.000000e+00> : vector<256xf32>
    %25 = vector.multi_reduction <add>, %24, %cst_8 [0] : vector<50x256xf32> to vector<256xf32>
    %26 = vector.shape_cast %25 : vector<256xf32> to vector<1x256xf32>
    %27 = vector.broadcast %8 : vector<50x1xf32> to vector<50x256xf32>
    %28 = arith.mulf %24, %27 : vector<50x256xf32>
    %cst_9 = arith.constant dense<0.000000e+00> : vector<256xf32>
    %29 = vector.multi_reduction <add>, %28, %cst_9 [0] : vector<50x256xf32> to vector<256xf32>
    %30 = vector.shape_cast %29 : vector<256xf32> to vector<1x256xf32>
    %31 = tpu.reciprocal %26 : vector<1x256xf32> -> vector<1x256xf32>
    %32 = arith.mulf %30, %31 : vector<1x256xf32>
    %c0_10 = arith.constant 0 : index
    %c0_11 = arith.constant 0 : index
    %33 = vector.load %arg5[%c0_10, %c0_11] : memref<1x256xf32, #tpu.memory_space<vmem>>, vector<1x256xf32>
    tpu.vector_store %arg5[%c0_10, %c0_11], %32 {strides = array<i32>} : memref<1x256xf32, #tpu.memory_space<vmem>>, vector<1x256xf32>,
    return
  }
  func.func @transform_0(%arg0: i32) -> i32 {
    %c0_i32 = arith.constant 0 : i32
    %c0_i32_0 = arith.constant 0 : i32
    return %c0_i32 : i32
  }
  func.func @transform_1(%arg0: i32) -> (i32, i32) {
    %c0_i32 = arith.constant 0 : i32
    %c0_i32_0 = arith.constant 0 : i32
    return %c0_i32, %arg0 : i32, i32
  }
  func.func @transform_2(%arg0: i32) -> (i32, i32) {
    %c0_i32 = arith.constant 0 : i32
    %c0_i32_0 = arith.constant 0 : i32
    %c0_i32_1 = arith.constant 0 : i32
    return %c0_i32, %c0_i32_0 : i32, i32
  }
  func.func @transform_3(%arg0: i32) -> (i32, i32) {
    %c0_i32 = arith.constant 0 : i32
    %c0_i32_0 = arith.constant 0 : i32
    %c0_i32_1 = arith.constant 0 : i32
    return %c0_i32, %c0_i32_0 : i32, i32
  }
  func.func @transform_4(%arg0: i32) -> (i32, i32) {
    %c0_i32 = arith.constant 0 : i32
    %c0_i32_0 = arith.constant 0 : i32
    return %c0_i32, %arg0 : i32, i32
  }
}

</mosaic_0001>

<bundles_post_ra>
// kernel: tpu_custom_call.1
= control target key start
LH: loop header
LB: loop body
LE: loop exit
PB: predicated region body
PF: predicated region fallthrough
CT: control target
= control target key end

     0   :  { %v508_v1 = vmov 0   ;;  %s622_s0 = inlined_call_operand.<no memory space> [shape: f32[1], index: 0, kind: input, shape index: {}]   ;;  %s623_s1 = inlined_call_operand.vmem [shape: bf16[1,256], index: 1, kind: input, shape index: {}]   ;;  %s624_s2 = inlined_call_operand.vmem [shape: bf16[50,1], index: 2, kind: input, shape index: {}]   ;;  %s625_s3 = inlined_call_operand.vmem [shape: bf16[50,1], index: 3, kind: input, shape index: {}]   ;;  %s626_s4 = inlined_call_operand.hbm [shape: f32[1,256], index: 4, kind: output, shape index: {}]  }
   0x1   :  { %s20_s17 = smul.f32 -0.5, %s622_s0  ;;  %v405_v0 = vld [vmem:[%s624_s2] sm:$0xff]   ;;  %435 = vset.pattern.permute.xlu1 %v508_v1  ;;  %436 = vset.pattern.permute.xlu0 %v508_v1  ;;  %v428_v3 = vld [vmem:[%s624_s2 + $0x8] sm:$0xff]  }
   0x2   :  { %v406_v2 = vunpack.c.l.bf16 %v405_v0  ;;  %v407_v5 = vunpack.c.h.bf16 %v405_v0 }
   0x3   :  { %s21_s22 = smul.f32 %s20_s17, %s622_s0 }
   0x4   :  { %v52_v4 = vmul.f32 %v406_v2, %v406_v2 }
   0x5   :  { %10 = vsyncpa [#allocation4], 0  ;;  %v59_v6 = vstv %s21_s22  ;;  %s67_s25 = smul.f32 -2.0, %s21_s22  ;;  %v410_v8 = vunpack.c.l.bf16 %v428_v3  ;;  %v429_v10 = vld [vmem:[%s624_s2 + $0x10] sm:$0xff]   ;;  %v411_v13 = vunpack.c.h.bf16 %v428_v3  ;;  %v30_v14 = vld [vmem:[%s624_s2 + $0x18] sm:$0x1]  ;;  %v53_v22 = vmul.f32 %v407_v5, %v407_v5 }
   0x6   :  { %v60_v7 = vmul.f32 %v59_v6, %v52_v4  ;;  %v414_v16 = vunpack.c.l.bf16 %v429_v10  ;;  %v37_v18 = vunpack.c.l.bf16 %v30_v14  ;;  %v415_v24 = vunpack.c.h.bf16 %v429_v10  ;;  %v430_v31 = vld [vmem:[%s625_s3 + $0x8] sm:$0xff]   ;;  %v417_v34 = vld [vmem:[%s625_s3] sm:$0xff]   ;;  %v431_v41 = vld [vmem:[%s625_s3 + $0x10] sm:$0xff]  }
   0x7   :  { %v68_v9 = vstv %s67_s25  ;;  %v54_v20 = vmul.f32 %v410_v8, %v410_v8  ;;  %v61_v25 = vmul.f32 %v59_v6, %v53_v22  ;;  %v55_v28 = vmul.f32 %v411_v13, %v411_v13  ;;  %v44_v43 = vld [vmem:[%s625_s3 + $0x18] sm:$0x1]  ;;  %v22_v53 = vld [vmem:[%s623_s1] sm:$0x3]  ;;  %s510_s1 = smov [#allocation3]  }
   0x8   :  { %146 = vperm.xlu1 %435, %v60_v7   ;;  %v69_v11 = vmul.f32 %v406_v2, %v68_v9  ;;  %v70_v12 = vmul.f32 %v407_v5, %v68_v9  ;;  %v71_v15 = vmul.f32 %v410_v8, %v68_v9  ;;  %v72_v17 = vmul.f32 %v411_v13, %v68_v9  ;;  %s396_s3 = sshll.u32 %s510_s1, 4  ;;  %s397_s3 = int_to_ptr.vmem [resolvable:$true] %s396_s3 }
   0x9   :  { %v73_v19 = vmul.f32 %v414_v16, %v68_v9  ;;  %v75_v21 = vmul.f32 %v68_v9, %v37_v18  ;;  %v62_v23 = vmul.f32 %v59_v6, %v54_v20  ;;  %v56_v26 = vmul.f32 %v414_v16, %v414_v16  ;;  %s484_s12 = scalar_lea.vmem %s397_s3, 32  ;;  %p489_p1 = scmp.lt.s32.totalorder %s397_s3, %s397_s3 }
   0xa   :  { %78 = vperm.xlu0 %436, %v69_v11   ;;  %v74_v27 = vmul.f32 %v415_v24, %v68_v9  ;;  %v57_v30 = vmul.f32 %v415_v24, %v415_v24  ;;  %v63_v32 = vmul.f32 %v59_v6, %v55_v28  ;;  %v58_v33 = vmul.f32 %v37_v18, %v37_v18  ;;  %p485_p0 = scmp.ne.s32.totalorder %s397_s3, %s484_s12  ;;  %p490_p2 = scmp.lt.s32.totalorder %s484_s12, %s484_s12 }
   0xb   :  { %v64_v29 = vmul.f32 %v59_v6, %v56_v26  ;;  %v422_v36 = vunpack.c.l.bf16 %v430_v31  ;;  %v423_v37 = vunpack.c.h.bf16 %v430_v31  ;;  %v418_v39 = vunpack.c.l.bf16 %v417_v34 }
   0xc   :  { %83 = vperm.xlu1 %435, %v70_v12   ;;  %v65_v35 = vmul.f32 %v59_v6, %v57_v30  ;;  %v66_v38 = vmul.f32 %v59_v6, %v58_v33  ;;  %v419_v40 = vunpack.c.h.bf16 %v417_v34  ;;  %v426_v45 = vunpack.c.l.bf16 %v431_v41  ;;  %p491_p3 = por %p490_p2, %p489_p1 }
   0xd   :  { %v442_v42 = vpack.i.bf16 %v423_v37, %v422_v36  ;;  %v427_v46 = vunpack.c.h.bf16 %v431_v41  ;;  %v51_v47 = vunpack.c.l.bf16 %v44_v43  ;;  %v112_v49 = vlaneseq }
   0xe   :  { %88 = vperm.xlu0 %436, %v71_v15   ;;  %v437_v44 = vpack.i.bf16 %v419_v40, %v418_v39  ;;  %v23_v55 = vunpack.c.l.bf16 %v22_v53  ;;  %vm197_vm0 = vcmask 1041408   ;;  %p492_p4 = pnand %p491_p3, %p485_p0 }
   0xf   :  { %v447_v48 = vpack.i.bf16 %v427_v46, %v426_v45  ;;  %v567_v51 = vshrl.u32 %v112_v49, 7  ;;  %vm387_vm1 = vcmp.lt.s32.totalorder %v112_v49, 256 }
  0x10   :  { %93 = vperm.xlu1 %435, %v72_v17  }
  0x11   :  { %v114_v56 = vsub.s32 0, %v567_v51  ;;  %v118_v57 = vsub.s32 2, %v567_v51 }
  0x12   :  { %98 = vperm.xlu0 %436, %v73_v19  }
  0x13   :  { %v115_v60 = vrot.slane %v23_v55, %v114_v56  ;;  %v119_v61 = vrot.slane %v23_v55, %v118_v57 }
  0x14   :  { %108 = vperm.xlu1 %435, %v75_v21  }
  0x15   :  { %v125_v0 = vrot.slane %v115_v60, %v114_v56  ;;  %v129_v1 = vrot.slane %v119_v61, %v114_v56 }
  0x16   :  { %156 = vperm.xlu0 %436, %v62_v23  }
  0x18   :  { %151 = vperm.xlu1 %435, %v61_v25  }
  0x1a   :  { %103 = vperm.xlu0 %436, %v74_v27  }
  0x1c   :  { %166 = vperm.xlu1 %435, %v64_v29  }
  0x1e   :  { %161 = vperm.xlu0 %436, %v63_v32  }
  0x20   :  { %171 = vperm.xlu1 %435, %v65_v35  }
  0x22   :  { %176 = vperm.xlu0 %436, %v66_v38  }
  0x24   :  { %443 = vperm.xlu1 %435, %v442_v42  }
  0x26   :  { %438 = vperm.xlu0 %436, %v437_v44  }
  0x28   :  { %320 = vperm.xlu1 %435, %v51_v47  }
  0x2a   :  { %448 = vperm.xlu0 %436, %v447_v48  }
  0x87   :  { %v147_v50 = vpop.permute.xlu1 %146 }
  0x89   :  { %v79_v52 = vpop.permute.xlu0 %78 }
  0x8a   :  { %v130_v4 = vmul.f32 %v125_v0, %v79_v52  ;;  %v131_v5 = vmul.f32 %v129_v1, %v79_v52 }
  0x8b   :  { %v84_v54 = vpop.permute.xlu1 %83 }
  0x8c   :  { %v132_v9 = vmul.f32 %v125_v0, %v84_v54  ;;  %v133_v10 = vmul.f32 %v129_v1, %v84_v54  ;;  %v179_v16 = vadd.f32 %v147_v50, %v130_v4  ;;  %v574_v17 = vadd.f32 %v147_v50, %v131_v5 }
  0x8d   :  { %v89_v58 = vpop.permute.xlu0 %88 }
  0x8e   :  { %v134_v7 = vmul.f32 %v125_v0, %v89_v58  ;;  %v135_v8 = vmul.f32 %v129_v1, %v89_v58 }
  0x8f   :  { %v94_v59 = vpop.permute.xlu1 %93 }
  0x90   :  { %v136_v12 = vmul.f32 %v125_v0, %v94_v59  ;;  %v137_v13 = vmul.f32 %v129_v1, %v94_v59 }
  0x91   :  { %v99_v62 = vpop.permute.xlu0 %98 }
  0x92   :  { %v138_v18 = vmul.f32 %v125_v0, %v99_v62  ;;  %v139_v19 = vmul.f32 %v129_v1, %v99_v62 }
  0x93   :  { %v109_v63 = vpop.permute.xlu1 %108 }
  0x94   :  { %v142_v30 = vmul.f32 %v125_v0, %v109_v63  ;;  %v143_v31 = vmul.f32 %v129_v1, %v109_v63 }
  0x95   :  { %v157_v2 = vpop.permute.xlu0 %156 }
  0x96   :  { %v183_v14 = vadd.f32 %v157_v2, %v134_v7  ;;  %v184_v15 = vadd.f32 %v157_v2, %v135_v8 }
  0x97   :  { %v152_v3 = vpop.permute.xlu1 %151 }
  0x98   :  { %v181_v21 = vadd.f32 %v152_v3, %v132_v9  ;;  %v576_v22 = vadd.f32 %v152_v3, %v133_v10  ;;  %v193_v32 = vmax.f32 %v179_v16, %v183_v14  ;;  %v207_v33 = vmax.f32 %v574_v17, %v184_v15 }
  0x99   :  { %v104_v6 = vpop.permute.xlu0 %103 }
  0x9a   :  { %v140_v25 = vmul.f32 %v125_v0, %v104_v6  ;;  %v141_v26 = vmul.f32 %v129_v1, %v104_v6 }
  0x9b   :  { %v167_v11 = vpop.permute.xlu1 %166 }
  0x9c   :  { %v582_v27 = vadd.f32 %v167_v11, %v138_v18  ;;  %v584_v28 = vadd.f32 %v167_v11, %v139_v19 }
  0x9d   :  { %v162_v20 = vpop.permute.xlu0 %161 }
  0x9e   :  { %v578_v23 = vadd.f32 %v162_v20, %v136_v12  ;;  %v580_v24 = vadd.f32 %v162_v20, %v137_v13  ;;  %v195_v41 = vmax.f32 %v193_v32, %v582_v27  ;;  %v209_v42 = vmax.f32 %v207_v33, %v584_v28 }
  0x9f   :  { %v172_v29 = vpop.permute.xlu1 %171 }
  0xa0   :  { %v194_v34 = vmax.f32 %v181_v21, %v578_v23  ;;  %v208_v35 = vmax.f32 %v576_v22, %v580_v24  ;;  %v189_v36 = vadd.f32 %v172_v29, %v140_v25  ;;  %v590_v37 = vadd.f32 %v172_v29, %v141_v26 }
  0xa1   :  { %v177_v38 = vpop.permute.xlu0 %176 }
  0xa2   :  { %v191_v39 = vadd.f32 %v177_v38, %v142_v30  ;;  %v192_v40 = vadd.f32 %v177_v38, %v143_v31  ;;  %v196_v45 = vmax.f32 %v194_v34, %v189_v36  ;;  %v210_v46 = vmax.f32 %v208_v35, %v590_v37 }
  0xa4   :  { %v198_v43 = vsel %vm197_vm0, %v191_v39, -inf  ;;  %v211_v44 = vsel %vm197_vm0, %v192_v40, -inf }
  0xa5   :  { %v199_v47 = vmax.f32 %v195_v41, %v198_v43  ;;  %v212_v48 = vmax.f32 %v209_v42, %v211_v44  ;;  %v439_v31 = vpop.permute.xlu0 %438 }
  0xa6   :  { %v440_v34 = vunpack.i.l.bf16 %v439_v31  ;;  %v441_v38 = vunpack.i.h.bf16 %v439_v31 }
  0xa7   :  { %v200_v50 = vmax.f32 %v199_v47, %v196_v45  ;;  %v213_v52 = vmax.f32 %v212_v48, %v210_v46 }
  0xa9   :  { %v201_v53 = vrot.slane %v200_v50, 4  ;;  %v214_v54 = vrot.slane %v213_v52, 4 }
  0xab   :  { %v202_v55 = vmax.f32 %v200_v50, %v201_v53  ;;  %v215_v56 = vmax.f32 %v213_v52, %v214_v54  ;;  %v449_v50 = vpop.permute.xlu0 %448 }
  0xad   :  { %v203_v57 = vrot.slane %v202_v55, 2  ;;  %v216_v58 = vrot.slane %v215_v56, 2 }
  0xaf   :  { %v204_v59 = vmax.f32 %v202_v55, %v203_v57  ;;  %v217_v60 = vmax.f32 %v215_v56, %v216_v58 }
  0xb1   :  { %v205_v61 = vrot.slane %v204_v59, 1  ;;  %v218_v62 = vrot.slane %v217_v60, 1 }
  0xb3   :  { %v206_v63 = vmax.f32 %v204_v59, %v205_v61  ;;  %v219_v0 = vmax.f32 %v217_v60, %v218_v62 }
  0xb5   :  { %v232_v1 = vsub.f32 %v191_v39, %v206_v63  ;;  %v233_v2 = vsub.f32 %v192_v40, %v219_v0  ;;  %v224_v3 = vsub.f32 %v183_v14, %v206_v63  ;;  %v225_v4 = vsub.f32 %v184_v15, %v219_v0 }
  0xb6   :  { %v220_v6 = vsub.f32 %v179_v16, %v206_v63  ;;  %v221_v8 = vsub.f32 %v574_v17, %v219_v0  ;;  %v222_v10 = vsub.f32 %v181_v21, %v206_v63  ;;  %v223_v12 = vsub.f32 %v576_v22, %v219_v0 }
  0xb7   :  { %v258_v5 = vmul.f32 1.442695, %v232_v1  ;;  %v260_v7 = vmul.f32 1.442695, %v233_v2  ;;  %v242_v9 = vmul.f32 1.442695, %v224_v3  ;;  %v226_v13 = vsub.f32 %v578_v23, %v206_v63 }
  0xb8   :  { %v244_v11 = vmul.f32 1.442695, %v225_v4  ;;  %v234_v18 = vmul.f32 1.442695, %v220_v6  ;;  %v227_v19 = vsub.f32 %v580_v24, %v219_v0  ;;  %v236_v20 = vmul.f32 1.442695, %v221_v8 }
  0xb9   :  { %452 = vpow2.f32 %v258_v5  ;;  %v238_v14 = vmul.f32 1.442695, %v222_v10  ;;  %v228_v15 = vsub.f32 %v582_v27, %v206_v63  ;;  %v240_v16 = vmul.f32 1.442695, %v223_v12 }
  0xba   :  { %454 = vpow2.f32 %v260_v7  ;;  %v229_v17 = vsub.f32 %v584_v28, %v219_v0  ;;  %v246_v21 = vmul.f32 1.442695, %v226_v13  ;;  %v230_v25 = vsub.f32 %v189_v36, %v206_v63  ;;  %v444_v36 = vpop.permute.xlu1 %443 }
  0xbb   :  { %456 = vpow2.f32 %v242_v9  ;;  %v248_v22 = vmul.f32 1.442695, %v227_v19  ;;  %v231_v23 = vsub.f32 %v590_v37, %v219_v0  ;;  %v250_v26 = vmul.f32 1.442695, %v228_v15 }
  0xbc   :  { %458 = vpow2.f32 %v244_v11  ;;  %v252_v24 = vmul.f32 1.442695, %v229_v17  ;;  %v254_v29 = vmul.f32 1.442695, %v230_v25  ;;  %v445_v43 = vunpack.i.l.bf16 %v444_v36 }
  0xbd   :  { %460 = vpow2.f32 %v234_v18  ;;  %v256_v30 = vmul.f32 1.442695, %v231_v23  ;;  %v446_v53 = vunpack.i.h.bf16 %v444_v36  ;;  %v450_v0 = vunpack.i.l.bf16 %v449_v50 }
  0xbe   :  { %462 = vpow2.f32 %v236_v20  ;;  %v321_v7 = vpop.permute.xlu1 %320  ;;  %v451_v8 = vunpack.i.h.bf16 %v449_v50 }
  0xbf   :  { %464 = vpow2.f32 %v238_v14 }
  0xc0   :  { %466 = vpow2.f32 %v240_v16 }
  0xc1   :  { %468 = vpow2.f32 %v246_v21 }
  0xc2   :  { %470 = vpow2.f32 %v248_v22 }
  0xc3   :  { %v453_v27 = vpop.eup %452  ;;  %472 = vpow2.f32 %v250_v26 }
  0xc4   :  { %v455_v32 = vpop.eup %454  ;;  %474 = vpow2.f32 %v252_v24  ;;  %v335_v12 = vmul.f32 %v453_v27, %v321_v7  ;;  %v267_v17 = vsel %vm197_vm0, %v453_v27, 0.0 }
  0xc5   :  { %v457_v28 = vpop.eup %456  ;;  %476 = vpow2.f32 %v254_v29  ;;  %v336_v20 = vmul.f32 %v455_v32, %v321_v7  ;;  %v280_v23 = vsel %vm197_vm0, %v455_v32, 0.0 }
  0xc6   :  { %v459_v33 = vpop.eup %458  ;;  %478 = vpow2.f32 %v256_v30  ;;  %v327_v54 = vmul.f32 %v457_v28, %v445_v43  ;;  %v342_v29 = vsel %vm197_vm0, %v335_v12, 0.0 }
  0xc7   :  { %v461_v35 = vpop.eup %460  ;;  %v328_v58 = vmul.f32 %v459_v33, %v445_v43 }
  0xc8   :  { %v463_v37 = vpop.eup %462  ;;  %v323_v39 = vmul.f32 %v461_v35, %v440_v34 }
  0xc9   :  { %v465_v40 = vpop.eup %464  ;;  %v324_v41 = vmul.f32 %v463_v37, %v440_v34 }
  0xca   :  { %v467_v42 = vpop.eup %466  ;;  %v262_v44 = vadd.f32 %v465_v40, %v461_v35  ;;  %v325_v45 = vmul.f32 %v465_v40, %v441_v38 }
  0xcb   :  { %v469_v46 = vpop.eup %468  ;;  %v275_v47 = vadd.f32 %v467_v42, %v463_v37  ;;  %v326_v48 = vmul.f32 %v467_v42, %v441_v38 }
  0xcc   :  { %v471_v52 = vpop.eup %470  ;;  %v263_v55 = vadd.f32 %v457_v28, %v262_v44  ;;  %v337_v56 = vadd.f32 %v325_v45, %v323_v39  ;;  %v329_v62 = vmul.f32 %v469_v46, %v446_v53  ;;  %v355_v28 = vsel %vm197_vm0, %v336_v20, 0.0 }
  0xcd   :  { %v473_v57 = vpop.eup %472  ;;  %v276_v59 = vadd.f32 %v459_v33, %v275_v47  ;;  %v350_v60 = vadd.f32 %v326_v48, %v324_v41  ;;  %v330_v3 = vmul.f32 %v471_v52, %v446_v53 }
  0xce   :  { %v475_v61 = vpop.eup %474  ;;  %v338_v63 = vadd.f32 %v337_v56, %v327_v54  ;;  %v264_v1 = vadd.f32 %v469_v46, %v263_v55  ;;  %v331_v10 = vmul.f32 %v473_v57, %v450_v0  ;;  %v509_v55 = vmov 1966171168  }
  0xcf   :  { %v477_v2 = vpop.eup %476  ;;  %v351_v4 = vadd.f32 %v350_v60, %v328_v58  ;;  %v277_v5 = vadd.f32 %v471_v52, %v276_v59  ;;  %v332_v18 = vmul.f32 %v475_v61, %v450_v0  ;;  %v371_v56 = vunpack.c.l.s4 %v509_v55 }
  0xd0   :  { %v479_v6 = vpop.eup %478  ;;  %v265_v9 = vadd.f32 %v473_v57, %v264_v1  ;;  %v339_v11 = vadd.f32 %v338_v63, %v329_v62  ;;  %v333_v15 = vmul.f32 %v477_v2, %v451_v8 }
  0xd1   :  { %v278_v13 = vadd.f32 %v475_v61, %v277_v5  ;;  %v352_v19 = vadd.f32 %v351_v4, %v330_v3  ;;  %v334_v25 = vmul.f32 %v479_v6, %v451_v8  ;;  %v372_v59 = vunpack.c.0.s8 %v371_v56 }
  0xd2   :  { %v266_v14 = vadd.f32 %v477_v2, %v265_v9  ;;  %v340_v16 = vadd.f32 %v339_v11, %v331_v10 }
  0xd3   :  { %v279_v21 = vadd.f32 %v479_v6, %v278_v13  ;;  %v353_v22 = vadd.f32 %v352_v19, %v332_v18  ;;  %v375_v2 = vsub.s32 %v372_v59, %v567_v51 }
  0xd4   :  { %v268_v26 = vadd.f32 %v267_v17, %v266_v14  ;;  %v341_v24 = vadd.f32 %v340_v16, %v333_v15 }
  0xd5   :  { %v281_v30 = vadd.f32 %v280_v23, %v279_v21  ;;  %v354_v31 = vadd.f32 %v353_v22, %v334_v25 }
  0xd6   :  { %v343_v33 = vadd.f32 %v342_v29, %v341_v24  ;;  %v269_v34 = vrot.slane %v268_v26, 4 }
  0xd7   :  { %v356_v35 = vadd.f32 %v355_v28, %v354_v31  ;;  %v282_v36 = vrot.slane %v281_v30, 4 }
  0xd8   :  { %v344_v37 = vrot.slane %v343_v33, 4  ;;  %v270_v38 = vadd.f32 %v269_v34, %v268_v26 }
  0xd9   :  { %v357_v27 = vrot.slane %v356_v35, 4  ;;  %v283_v39 = vadd.f32 %v282_v36, %v281_v30 }
  0xda   :  { %v271_v40 = vrot.slane %v270_v38, 2  ;;  %v345_v41 = vadd.f32 %v344_v37, %v343_v33 }
  0xdb   :  { %v284_v42 = vrot.slane %v283_v39, 2  ;;  %v358_v32 = vadd.f32 %v357_v27, %v356_v35 }
  0xdc   :  { %v272_v43 = vadd.f32 %v271_v40, %v270_v38  ;;  %v346_v46 = vrot.slane %v345_v41, 2 }
  0xdd   :  { %v285_v44 = vadd.f32 %v284_v42, %v283_v39  ;;  %v359_v48 = vrot.slane %v358_v32, 2 }
  0xde   :  { %v273_v45 = vrot.slane %v272_v43, 1  ;;  %v347_v53 = vadd.f32 %v346_v46, %v345_v41 }
  0xdf   :  { %v286_v47 = vrot.slane %v285_v44, 1  ;;  %v360_v54 = vadd.f32 %v359_v48, %v358_v32 }
  0xe0   :  { %v274_v50 = vadd.f32 %v273_v45, %v272_v43  ;;  %v348_v57 = vrot.slane %v347_v53, 1 }
  0xe1   :  { %v287_v52 = vadd.f32 %v286_v47, %v285_v44  ;;  %v361_v58 = vrot.slane %v360_v54, 1 }
  0xe2   :  { %480 = vrcp.f32 %v274_v50  ;;  %v349_v60 = vadd.f32 %v348_v57, %v347_v53 }
  0xe3   :  { %482 = vrcp.f32 %v287_v52  ;;  %v362_v62 = vadd.f32 %v361_v58, %v360_v54 }
  0xec   :  { %v481_v61 = vpop.eup %480 }
  0xed   :  { %v483_v63 = vpop.eup %482  ;;  %v365_v0 = vmul.f32 %v481_v61, %v349_v60 }
  0xee   :  { %v366_v1 = vmul.f32 %v483_v63, %v362_v62 }
  0xf0   :  { %v369_v3 = vcombine.low %v365_v0, %v366_v1 }
  0xf2   :  { %v376_v4 = vrot.slane %v369_v3, %v375_v2 }
  0xf4   :  { %v383_v5 = vrot.slane %v376_v4, %v375_v2 }
  0xf6   :  { %389 = vst.msk [vmem:[#allocation3] sm:$0x3] %vm387_vm1, %v383_v5 }
  0xf7   :  { %495 = shalt.err (!%p492_p4)
}
  0xf8   :  { %s496_s15 = scalar_lea.hbm %s626_s4, 32 }
  0xf9   :  { %p497_p5 = scmp.ne.s32.totalorder %s626_s4, %s496_s15  ;;  %p500_p6 = scmp.lt.u32.totalorder %s496_s15, %s626_s4 }
  0xfb   :  { %p502_p7 = pnand %p500_p6, %p497_p5 }
  0xfd   :  { %505 = shalt.err (!%p502_p7)
}
  0xfe   :  { %399 = dma.vmem_to_hbm [thread:$0]  %s397_s3, 32, %s626_s4, [#allocation4]  }
  0xff   :  { %506 = dma.done.wait [#allocation4], 32  }
 0x100   :  { %507 = vsyncadd [#allocation4], 4294967264 }
 0x101   :  { %403 = vsyncpa [#allocation4], 1 }

</bundles_post_ra>
